<compile_context>
chip_gen: v7x
topology: tpu7x:2x2x1
jax: 0.10.0
libtpu: 0.0.40
codegen_flags: <defaults>
</compile_context>

<pallas_src>
import math

import jax
import jax.numpy as jnp
from jax.experimental import pallas as pl
from jax.experimental.pallas import tpu as pltpu

EPS = 1e-5
USE_BF16_MATMUL = True          # halves A^T / y HBM bytes; f32 MXU accumulation kept.
VMEM_LIMIT = 32 * 1024 * 1024   # safe on v5e/v6e (128 MiB) and v7x (64 MiB).
MAX_TILE = 8192                 # lane-tile cap (review: 1024 was latency-dominated).


def _round_up(x, m):
    return (x + m - 1) // m * m


def _plan_tiles(m):
    """Pick (tm, n_par, nt_inner, Mp): lane tile (multiple of 128), a >=2-way parallel
    split for v7x megacore whenever there are >= 2 tiles, inner tile count, padded M."""
    mp = _round_up(m, 128)
    if mp <= 128:
        return 128, 1, 1, 128
    nt = max(2, pl.cdiv(mp, MAX_TILE))
    nt += nt % 2
    tm = _round_up(pl.cdiv(mp, nt), 128)
    nt = pl.cdiv(mp, tm)
    nt += nt % 2
    n_par = 2
    return tm, n_par, nt // n_par, nt * tm


# ---------------------------------------------------------------------------
# Pallas kernel: lane-dense matmul + accumulated per-channel BN statistics.
#   y[:, tile] = W @ A[:, tile]   (f32 accumulation, big M axis on the 128 lanes)
#   ssum/ssq accumulated in the resident output block over the inner grid axis.
# ---------------------------------------------------------------------------
def _matmul_stats_kernel(w_ref, a_ref, y_ref, ssum_ref, ssq_ref):
    y = jnp.dot(w_ref[...], a_ref[...], preferred_element_type=jnp.float32)
    y_ref[...] = y.astype(y_ref.dtype)
    s = jnp.sum(y, axis=1, keepdims=True)        # [C, 1] lane reduction (XLU)
    sq = jnp.sum(y * y, axis=1, keepdims=True)   # [C, 1]
    first = pl.program_id(1) == 0

    @pl.when(first)
    def _():
        ssum_ref[0] = s
        ssq_ref[0] = sq

    @pl.when(jnp.logical_not(first))
    def _():
        ssum_ref[0] += s
        ssq_ref[0] += sq


def matmul_with_stats(w, a, tm, n_par, nt_inner, y_dtype):
    """w: [C, K], a: [K, Mp] -> y [C, Mp] (y_dtype), ssum/ssq [n_par, C, 1] (f32)."""
    C, K = w.shape
    Mp = a.shape[1]
    assert Mp == n_par * nt_inner * tm
    flops = 2 * C * K * Mp
    bytes_accessed = (w.size * w.dtype.itemsize + a.size * a.dtype.itemsize
                      + C * Mp * jnp.dtype(y_dtype).itemsize + 2 * n_par * C * 4)
    return pl.pallas_call(
        _matmul_stats_kernel,
        out_shape=(
            jax.ShapeDtypeStruct((C, Mp), y_dtype),
            jax.ShapeDtypeStruct((n_par, C, 1), jnp.float32),
            jax.ShapeDtypeStruct((n_par, C, 1), jnp.float32),
        ),
        grid_spec=pl.GridSpec(
            grid=(n_par, nt_inner),
            in_specs=[
                pl.BlockSpec((C, K), lambda p, i: (0, 0)),
                pl.BlockSpec((K, tm), lambda p, i: (0, p * nt_inner + i)),
            ],
            out_specs=(
                pl.BlockSpec((C, tm), lambda p, i: (0, p * nt_inner + i)),
                pl.BlockSpec((1, C, 1), lambda p, i: (p, 0, 0)),
                pl.BlockSpec((1, C, 1), lambda p, i: (p, 0, 0)),
            ),
        ),
        compiler_params=pltpu.CompilerParams(
            dimension_semantics=("parallel", "arbitrary"),
            vmem_limit_bytes=VMEM_LIMIT,
        ),
        cost_estimate=pl.CostEstimate(
            flops=flops, transcendentals=0, bytes_accessed=bytes_accessed),
    )(w, a)


def _bn_affine(total, total_sq, count, gamma, beta):
    """Fold training-mode BN (biased variance) into per-channel scale/shift."""
    mean = total / count
    # NOTE: single-pass E[y^2]-E[y]^2; fine here since |mean| << std after random init.
    var = jnp.maximum(total_sq / count - mean * mean, 0.0)
    scale = gamma * jax.lax.rsqrt(var + EPS)
    shift = beta - mean * scale
    return scale, shift


# ---------------------------------------------------------------------------
# Layout glue (plain XLA): transposed im2col + collapsed deconv weights.
# ---------------------------------------------------------------------------
def _im2col_t_3x3(x_cnhw):
    """[C, N, H, W] -> A^T [9*C, N*H*W] for a 3x3 / pad-1 conv, rows = ((dh,dw), c)."""
    C, N, H, W = x_cnhw.shape
    xp = jnp.pad(x_cnhw, ((0, 0), (0, 0), (1, 1), (1, 1)))
    taps = [xp[:, :, dh:dh + H, dw:dw + W] for dh in range(3) for dw in range(3)]
    return jnp.stack(taps, axis=0).reshape(9 * C, N * H * W)


def _deconv_collapsed_weights(wt):
    """ConvTranspose2d(k=4, s=2, p=1) weight [Cmid, Cout, 4, 4] -> single-matmul form
    [4*Cout, 9*Cmid]: rows = (phase r, phase s, cout), cols = ((dh,dw) 3x3 tap, cmid).
    Each output-parity phase only touches 4 of the 9 taps; the rest stay zero."""
    Cmid, Cout = wt.shape[0], wt.shape[1]
    w = jnp.zeros((2, 2, Cout, 3, 3, Cmid), wt.dtype)
    for r in (0, 1):
        for s in (0, 1):
            for dh in (r, r + 1):
                for dw in (s, s + 1):
                    kh = 3 + r - 2 * dh
                    kw = 3 + s - 2 * dw
                    w = w.at[r, s, :, dh, dw, :].set(jnp.transpose(wt[:, :, kh, kw]))
    return w.reshape(4 * Cout, 9 * Cmid)


# ---------------------------------------------------------------------------
# DecoderBlock forward.
# ---------------------------------------------------------------------------
def decoder_block_forward(x_nchw, params):
    N, Cin, H, W = x_nchw.shape
    Cmid = params["conv1_w"].shape[0]
    Cout = params["deconv_w"].shape[1]
    M1 = N * H * W
    tm, n_par, nt_inner, Mp = _plan_tiles(M1)
    in_dtype = jnp.bfloat16 if USE_BF16_MATMUL else jnp.float32

    # ---- stage 1: Conv2d(3x3, pad=1) + BatchNorm2d(batch stats) + ReLU ----
    # Patches are emitted directly in the matmul input dtype (bf16 by default).
    a1 = _im2col_t_3x3(jnp.transpose(x_nchw, (1, 0, 2, 3)).astype(in_dtype))
    a1 = jnp.pad(a1, ((0, 0), (0, Mp - M1)))                  # pad cols contribute 0
    w1 = jnp.transpose(params["conv1_w"], (0, 2, 3, 1)).reshape(Cmid, 9 * Cin)
    y1, s1, q1 = matmul_with_stats(w1.astype(in_dtype), a1, tm, n_par, nt_inner, in_dtype)
    scale1, shift1 = _bn_affine(jnp.sum(s1, axis=0)[:, 0], jnp.sum(q1, axis=0)[:, 0],
                                M1, params["bn1_g"], params["bn1_b"])

    # ---- stage 2: ConvTranspose2d(k=4, s=2, p=1) + BatchNorm2d + ReLU ----
    # Stage-1 BN affine + ReLU is fused by XLA into the patch construction below, so
    # the separate elementwise pallas pass over y1 is gone.
    y1a = jnp.maximum(y1[:, :M1].astype(jnp.float32) * scale1[:, None] + shift1[:, None],
                      0.0)
    y1a = y1a.reshape(Cmid, N, H, W).astype(in_dtype)
    a2 = _im2col_t_3x3(y1a)                                   # [9*Cmid, M1]
    a2 = jnp.pad(a2, ((0, 0), (0, Mp - M1)))
    w2 = _deconv_collapsed_weights(params["deconv_w"])        # [4*Cout, 9*Cmid]
    y2, s2, q2 = matmul_with_stats(w2.astype(in_dtype), a2, tm, n_par, nt_inner, in_dtype)

    # BN statistics per out-channel pool the 4 output-parity phases (N * 2H * 2W).
    tot2 = jnp.sum(s2, axis=0)[:, 0].reshape(4, Cout).sum(axis=0)
    tsq2 = jnp.sum(q2, axis=0)[:, 0].reshape(4, Cout).sum(axis=0)
    scale2, shift2 = _bn_affine(tot2, tsq2, 4 * M1, params["bn2_g"], params["bn2_b"])

    # Finalize + phase interleave: relu(y2*scale+shift) is fused by XLA into the
    # un-phasing transpose -> one read of y2 and one write of the NCHW output.
    y2v = y2[:, :M1].astype(jnp.float32).reshape(2, 2, Cout, N, H, W)
    out = jnp.maximum(y2v * scale2.reshape(1, 1, Cout, 1, 1, 1)
                      + shift2.reshape(1, 1, Cout, 1, 1, 1), 0.0)
    # out[n, co, 2p+r, 2q+s] = y2[(r,s), co, n, p, q]
    return jnp.transpose(out, (3, 2, 4, 0, 5, 1)).reshape(N, Cout, 2 * H, 2 * W)


# ---------------------------------------------------------------------------
# Pure-JAX reference (for self-check) and parameter init.
# ---------------------------------------------------------------------------
def _reference_forward(x, params):
    y = jax.lax.conv_general_dilated(
        x, params["conv1_w"], (1, 1), ((1, 1), (1, 1)),
        dimension_numbers=("NCHW", "OIHW", "NCHW"))
    y = y + params["conv1_b"].reshape(1, -1, 1, 1)
    mean = jnp.mean(y, axis=(0, 2, 3), keepdims=True)
    var = jnp.mean(jnp.square(y - mean), axis=(0, 2, 3), keepdims=True)
    y = (y - mean) * jax.lax.rsqrt(var + EPS)
    y = jnp.maximum(y * params["bn1_g"].reshape(1, -1, 1, 1)
                    + params["bn1_b"].reshape(1, -1, 1, 1), 0.0)
    # ConvTranspose2d == lhs-dilated conv with the flipped, channel-swapped kernel.
    wt = params["deconv_w"]
    w_flip = jnp.flip(wt, (2, 3)).transpose(1, 0, 2, 3)               # [Cout, Cmid, 4, 4]
    z = jax.lax.conv_general_dilated(
        y, w_flip, (1, 1), ((2, 2), (2, 2)), lhs_dilation=(2, 2),
        dimension_numbers=("NCHW", "OIHW", "NCHW"))
    z = z + params["deconv_b"].reshape(1, -1, 1, 1)
    mean = jnp.mean(z, axis=(0, 2, 3), keepdims=True)
    var = jnp.mean(jnp.square(z - mean), axis=(0, 2, 3), keepdims=True)
    z = (z - mean) * jax.lax.rsqrt(var + EPS)
    return jnp.maximum(z * params["bn2_g"].reshape(1, -1, 1, 1)
                       + params["bn2_b"].reshape(1, -1, 1, 1), 0.0)


def init_params(key, in_channels, middle_channels, out_channels):
    k1, k2, k3, k4 = jax.random.split(key, 4)
    n = 3 * 3 * middle_channels
    conv1_w = jax.random.normal(k1, (middle_channels, in_channels, 3, 3),
                                jnp.float32) * math.sqrt(2.0 / n)
    conv1_b = 0.1 * jax.random.normal(k2, (middle_channels,), jnp.float32)
    fan_in = middle_channels * 4 * 4
    bound = 1.0 / math.sqrt(fan_in)
    deconv_w = jax.random.uniform(k3, (middle_channels, out_channels, 4, 4),
                                  jnp.float32, -bound, bound)
    deconv_b = jax.random.uniform(k4, (out_channels,), jnp.float32, -bound, bound)
    return dict(
        conv1_w=conv1_w, conv1_b=conv1_b,
        bn1_g=jnp.ones((middle_channels,), jnp.float32),
        bn1_b=jnp.zeros((middle_channels,), jnp.float32),
        deconv_w=deconv_w, deconv_b=deconv_b,
        bn2_g=jnp.ones((out_channels,), jnp.float32),
        bn2_b=jnp.zeros((out_channels,), jnp.float32),
    )


if __name__ == "__main__":
    in_channels, middle_channels, out_channels = 4, 8, 4
    N, H, W = 2, 16, 16

    key = jax.random.PRNGKey(0)
    kx, kp = jax.random.split(key)
    x = jax.random.normal(kx, (N, in_channels, H, W), jnp.float32)
    params = init_params(kp, in_channels, middle_channels, out_channels)

    out = jax.jit(decoder_block_forward)(x, params)
    out = jax.block_until_ready(out)

    assert out.shape == (N, out_channels, 2 * H, 2 * W), out.shape
    assert bool(jnp.all(jnp.isfinite(out)))
    assert bool(jnp.all(out >= 0.0))  # ReLU output

    ref = _reference_forward(x, params)
    max_err = float(jnp.max(jnp.abs(out - ref)))
    tol = 5e-2 if USE_BF16_MATMUL else 2e-3
    assert max_err < tol, f"mismatch vs reference: {max_err}"
    print("KERNEL_OK")
</pallas_src>

<mosaic_0001>
module attributes {stable_mosaic.version = 11 : i64} {
  func.func @_matmul_stats_kernel(%arg0: i32, %arg1: i32, %arg2: memref<8x36xbf16, #tpu.memory_space<vmem>>, %arg3: memref<36x256xbf16, #tpu.memory_space<vmem>>, %arg4: memref<8x256xbf16, #tpu.memory_space<vmem>>, %arg5: memref<1x8x1xf32, #tpu.memory_space<vmem>>, %arg6: memref<1x8x1xf32, #tpu.memory_space<vmem>>) attributes {dimension_semantics = [#tpu.dimension_semantics<parallel>, #tpu.dimension_semantics<arbitrary>], iteration_bounds = array<i64: 2, 1>, scalar_prefetch = 0 : i64, scratch_operands = 0 : i64, tpu.core_type = #tpu.core_type<tc>, window_params = [{pipeline_mode = #tpu.pipeline_mode<synchronous>, transform_indices = @transform_0, window_bounds = array<i64: 8, 36>}, {transform_indices = @transform_1, window_bounds = array<i64: 36, 256>}, {transform_indices = @transform_2, window_bounds = array<i64: 8, 256>}, {transform_indices = @transform_3, window_bounds = array<i64: 1, 8, 1>}, {transform_indices = @transform_4, window_bounds = array<i64: 1, 8, 1>}]} {
    %c0 = arith.constant 0 : index
    %c0_0 = arith.constant 0 : index
    %0 = vector.load %arg2[%c0, %c0_0] : memref<8x36xbf16, #tpu.memory_space<vmem>>, vector<8x36xbf16>
    %c0_1 = arith.constant 0 : index
    %c0_2 = arith.constant 0 : index
    %1 = vector.load %arg3[%c0_1, %c0_2] : memref<36x256xbf16, #tpu.memory_space<vmem>>, vector<36x256xbf16>
    %cst = arith.constant dense<0.000000e+00> : vector<8x256xf32>
    %2 = tpu.matmul %0, %1, %cst {dimension_numbers = #tpu.dot_dimension_numbers<[1], [0], [0], [1], [0, 0, 1, 1], [], []>} : vector<8x36xbf16>, vector<36x256xbf16>, vector<8x256xf32> -> vector<8x256xf32>
    %3 = arith.truncf %2 : vector<8x256xf32> to vector<8x256xbf16>
    %c0_3 = arith.constant 0 : index
    %c0_4 = arith.constant 0 : index
    %4 = vector.load %arg4[%c0_3, %c0_4] : memref<8x256xbf16, #tpu.memory_space<vmem>>, vector<8x256xbf16>
    tpu.vector_store %arg4[%c0_3, %c0_4], %3 {strides = array<i32>} : memref<8x256xbf16, #tpu.memory_space<vmem>>, vector<8x256xbf16>,
    %cst_5 = arith.constant dense<0.000000e+00> : vector<8xf32>
    %5 = vector.multi_reduction <add>, %2, %cst_5 [1] : vector<8x256xf32> to vector<8xf32>
    %6 = vector.shape_cast %5 : vector<8xf32> to vector<8x1xf32>
    %7 = arith.mulf %2, %2 : vector<8x256xf32>
    %cst_6 = arith.constant dense<0.000000e+00> : vector<8xf32>
    %8 = vector.multi_reduction <add>, %7, %cst_6 [1] : vector<8x256xf32> to vector<8xf32>
    %9 = vector.shape_cast %8 : vector<8xf32> to vector<8x1xf32>
    %c0_i32 = arith.constant 0 : i32
    %10 = arith.cmpi eq, %arg1, %c0_i32 : i32
    %11 = arith.extui %10 : i1 to i32
    %c0_i32_7 = arith.constant 0 : i32
    %12 = arith.cmpi ne, %11, %c0_i32_7 : i32
    scf.if %12 {
      %c0_9 = arith.constant 0 : index
      %c0_10 = arith.constant 0 : index
      %c0_11 = arith.constant 0 : index
      %16 = vector.load %arg5[%c0_9, %c0_10, %c0_11] : memref<1x8x1xf32, #tpu.memory_space<vmem>>, vector<1x8x1xf32>
      %17 = vector.shape_cast %16 : vector<1x8x1xf32> to vector<8x1xf32>
      %18 = vector.shape_cast %6 : vector<8x1xf32> to vector<1x8x1xf32>
      tpu.vector_store %arg5[%c0_9, %c0_10, %c0_11], %18 {strides = array<i32>} : memref<1x8x1xf32, #tpu.memory_space<vmem>>, vector<1x8x1xf32>,
      %c0_12 = arith.constant 0 : index
      %c0_13 = arith.constant 0 : index
      %c0_14 = arith.constant 0 : index
      %19 = vector.load %arg6[%c0_12, %c0_13, %c0_14] : memref<1x8x1xf32, #tpu.memory_space<vmem>>, vector<1x8x1xf32>
      %20 = vector.shape_cast %19 : vector<1x8x1xf32> to vector<8x1xf32>
      %21 = vector.shape_cast %9 : vector<8x1xf32> to vector<1x8x1xf32>
      tpu.vector_store %arg6[%c0_12, %c0_13, %c0_14], %21 {strides = array<i32>} : memref<1x8x1xf32, #tpu.memory_space<vmem>>, vector<1x8x1xf32>,
    } else {
    }
    %true = arith.constant true
    %13 = arith.xori %10, %true : i1
    %14 = arith.extui %13 : i1 to i32
    %c0_i32_8 = arith.constant 0 : i32
    %15 = arith.cmpi ne, %14, %c0_i32_8 : i32
    scf.if %15 {
      %c0_9 = arith.constant 0 : index
      %c0_10 = arith.constant 0 : index
      %c0_11 = arith.constant 0 : index
      %16 = vector.load %arg5[%c0_9, %c0_10, %c0_11] : memref<1x8x1xf32, #tpu.memory_space<vmem>>, vector<1x8x1xf32>
      %17 = vector.shape_cast %16 : vector<1x8x1xf32> to vector<8x1xf32>
      %18 = arith.addf %17, %6 : vector<8x1xf32>
      %c0_12 = arith.constant 0 : index
      %c0_13 = arith.constant 0 : index
      %c0_14 = arith.constant 0 : index
      %19 = vector.load %arg5[%c0_12, %c0_13, %c0_14] : memref<1x8x1xf32, #tpu.memory_space<vmem>>, vector<1x8x1xf32>
      %20 = vector.shape_cast %19 : vector<1x8x1xf32> to vector<8x1xf32>
      %21 = vector.shape_cast %18 : vector<8x1xf32> to vector<1x8x1xf32>
      tpu.vector_store %arg5[%c0_12, %c0_13, %c0_14], %21 {strides = array<i32>} : memref<1x8x1xf32, #tpu.memory_space<vmem>>, vector<1x8x1xf32>,
      %c0_15 = arith.constant 0 : index
      %c0_16 = arith.constant 0 : index
      %c0_17 = arith.constant 0 : index
      %22 = vector.load %arg6[%c0_15, %c0_16, %c0_17] : memref<1x8x1xf32, #tpu.memory_space<vmem>>, vector<1x8x1xf32>
      %23 = vector.shape_cast %22 : vector<1x8x1xf32> to vector<8x1xf32>
      %24 = arith.addf %23, %9 : vector<8x1xf32>
      %c0_18 = arith.constant 0 : index
      %c0_19 = arith.constant 0 : index
      %c0_20 = arith.constant 0 : index
      %25 = vector.load %arg6[%c0_18, %c0_19, %c0_20] : memref<1x8x1xf32, #tpu.memory_space<vmem>>, vector<1x8x1xf32>
      %26 = vector.shape_cast %25 : vector<1x8x1xf32> to vector<8x1xf32>
      %27 = vector.shape_cast %24 : vector<8x1xf32> to vector<1x8x1xf32>
      tpu.vector_store %arg6[%c0_18, %c0_19, %c0_20], %27 {strides = array<i32>} : memref<1x8x1xf32, #tpu.memory_space<vmem>>, vector<1x8x1xf32>,
    } else {
    }
    return
  }
  func.func @transform_0(%arg0: i32, %arg1: i32) -> (i32, i32) {
    %c0_i32 = arith.constant 0 : i32
    %c0_i32_0 = arith.constant 0 : i32
    %c0_i32_1 = arith.constant 0 : i32
    return %c0_i32, %c0_i32_0 : i32, i32
  }
  func.func @transform_1(%arg0: i32, %arg1: i32) -> (i32, i32) {
    %c1_i32 = arith.constant 1 : i32
    %0 = arith.muli %arg0, %c1_i32 : i32
    %1 = arith.addi %0, %arg1 : i32
    %c0_i32 = arith.constant 0 : i32
    %c0_i32_0 = arith.constant 0 : i32
    return %c0_i32, %1 : i32, i32
  }
  func.func @transform_2(%arg0: i32, %arg1: i32) -> (i32, i32) {
    %c1_i32 = arith.constant 1 : i32
    %0 = arith.muli %arg0, %c1_i32 : i32
    %1 = arith.addi %0, %arg1 : i32
    %c0_i32 = arith.constant 0 : i32
    %c0_i32_0 = arith.constant 0 : i32
    return %c0_i32, %1 : i32, i32
  }
  func.func @transform_3(%arg0: i32, %arg1: i32) -> (i32, i32, i32) {
    %c0_i32 = arith.constant 0 : i32
    %c0_i32_0 = arith.constant 0 : i32
    %c0_i32_1 = arith.constant 0 : i32
    return %arg0, %c0_i32, %c0_i32_0 : i32, i32, i32
  }
  func.func @transform_4(%arg0: i32, %arg1: i32) -> (i32, i32, i32) {
    %c0_i32 = arith.constant 0 : i32
    %c0_i32_0 = arith.constant 0 : i32
    %c0_i32_1 = arith.constant 0 : i32
    return %arg0, %c0_i32, %c0_i32_0 : i32, i32, i32
  }
}

module attributes {stable_mosaic.version = 11 : i64} {
  func.func @_matmul_stats_kernel(%arg0: i32, %arg1: i32, %arg2: memref<16x72xbf16, #tpu.memory_space<vmem>>, %arg3: memref<72x256xbf16, #tpu.memory_space<vmem>>, %arg4: memref<16x256xbf16, #tpu.memory_space<vmem>>, %arg5: memref<1x16x1xf32, #tpu.memory_space<vmem>>, %arg6: memref<1x16x1xf32, #tpu.memory_space<vmem>>) attributes {dimension_semantics = [#tpu.dimension_semantics<parallel>, #tpu.dimension_semantics<arbitrary>], iteration_bounds = array<i64: 2, 1>, scalar_prefetch = 0 : i64, scratch_operands = 0 : i64, tpu.core_type = #tpu.core_type<tc>, window_params = [{pipeline_mode = #tpu.pipeline_mode<synchronous>, transform_indices = @transform_0, window_bounds = array<i64: 16, 72>}, {transform_indices = @transform_1, window_bounds = array<i64: 72, 256>}, {transform_indices = @transform_2, window_bounds = array<i64: 16, 256>}, {transform_indices = @transform_3, window_bounds = array<i64: 1, 16, 1>}, {transform_indices = @transform_4, window_bounds = array<i64: 1, 16, 1>}]} {
    %c0 = arith.constant 0 : index
    %c0_0 = arith.constant 0 : index
    %0 = vector.load %arg2[%c0, %c0_0] : memref<16x72xbf16, #tpu.memory_space<vmem>>, vector<16x72xbf16>
    %c0_1 = arith.constant 0 : index
    %c0_2 = arith.constant 0 : index
    %1 = vector.load %arg3[%c0_1, %c0_2] : memref<72x256xbf16, #tpu.memory_space<vmem>>, vector<72x256xbf16>
    %cst = arith.constant dense<0.000000e+00> : vector<16x256xf32>
    %2 = tpu.matmul %0, %1, %cst {dimension_numbers = #tpu.dot_dimension_numbers<[1], [0], [0], [1], [0, 0, 1, 1], [], []>} : vector<16x72xbf16>, vector<72x256xbf16>, vector<16x256xf32> -> vector<16x256xf32>
    %3 = arith.truncf %2 : vector<16x256xf32> to vector<16x256xbf16>
    %c0_3 = arith.constant 0 : index
    %c0_4 = arith.constant 0 : index
    %4 = vector.load %arg4[%c0_3, %c0_4] : memref<16x256xbf16, #tpu.memory_space<vmem>>, vector<16x256xbf16>
    tpu.vector_store %arg4[%c0_3, %c0_4], %3 {strides = array<i32>} : memref<16x256xbf16, #tpu.memory_space<vmem>>, vector<16x256xbf16>,
    %cst_5 = arith.constant dense<0.000000e+00> : vector<16xf32>
    %5 = vector.multi_reduction <add>, %2, %cst_5 [1] : vector<16x256xf32> to vector<16xf32>
    %6 = vector.shape_cast %5 : vector<16xf32> to vector<16x1xf32>
    %7 = arith.mulf %2, %2 : vector<16x256xf32>
    %cst_6 = arith.constant dense<0.000000e+00> : vector<16xf32>
    %8 = vector.multi_reduction <add>, %7, %cst_6 [1] : vector<16x256xf32> to vector<16xf32>
    %9 = vector.shape_cast %8 : vector<16xf32> to vector<16x1xf32>
    %c0_i32 = arith.constant 0 : i32
    %10 = arith.cmpi eq, %arg1, %c0_i32 : i32
    %11 = arith.extui %10 : i1 to i32
    %c0_i32_7 = arith.constant 0 : i32
    %12 = arith.cmpi ne, %11, %c0_i32_7 : i32
    scf.if %12 {
      %c0_9 = arith.constant 0 : index
      %c0_10 = arith.constant 0 : index
      %c0_11 = arith.constant 0 : index
      %16 = vector.load %arg5[%c0_9, %c0_10, %c0_11] : memref<1x16x1xf32, #tpu.memory_space<vmem>>, vector<1x16x1xf32>
      %17 = vector.shape_cast %16 : vector<1x16x1xf32> to vector<16x1xf32>
      %18 = vector.shape_cast %6 : vector<16x1xf32> to vector<1x16x1xf32>
      tpu.vector_store %arg5[%c0_9, %c0_10, %c0_11], %18 {strides = array<i32>} : memref<1x16x1xf32, #tpu.memory_space<vmem>>, vector<1x16x1xf32>,
      %c0_12 = arith.constant 0 : index
      %c0_13 = arith.constant 0 : index
      %c0_14 = arith.constant 0 : index
      %19 = vector.load %arg6[%c0_12, %c0_13, %c0_14] : memref<1x16x1xf32, #tpu.memory_space<vmem>>, vector<1x16x1xf32>
      %20 = vector.shape_cast %19 : vector<1x16x1xf32> to vector<16x1xf32>
      %21 = vector.shape_cast %9 : vector<16x1xf32> to vector<1x16x1xf32>
      tpu.vector_store %arg6[%c0_12, %c0_13, %c0_14], %21 {strides = array<i32>} : memref<1x16x1xf32, #tpu.memory_space<vmem>>, vector<1x16x1xf32>,
    } else {
    }
    %true = arith.constant true
    %13 = arith.xori %10, %true : i1
    %14 = arith.extui %13 : i1 to i32
    %c0_i32_8 = arith.constant 0 : i32
    %15 = arith.cmpi ne, %14, %c0_i32_8 : i32
    scf.if %15 {
      %c0_9 = arith.constant 0 : index
      %c0_10 = arith.constant 0 : index
      %c0_11 = arith.constant 0 : index
      %16 = vector.load %arg5[%c0_9, %c0_10, %c0_11] : memref<1x16x1xf32, #tpu.memory_space<vmem>>, vector<1x16x1xf32>
      %17 = vector.shape_cast %16 : vector<1x16x1xf32> to vector<16x1xf32>
      %18 = arith.addf %17, %6 : vector<16x1xf32>
      %c0_12 = arith.constant 0 : index
      %c0_13 = arith.constant 0 : index
      %c0_14 = arith.constant 0 : index
      %19 = vector.load %arg5[%c0_12, %c0_13, %c0_14] : memref<1x16x1xf32, #tpu.memory_space<vmem>>, vector<1x16x1xf32>
      %20 = vector.shape_cast %19 : vector<1x16x1xf32> to vector<16x1xf32>
      %21 = vector.shape_cast %18 : vector<16x1xf32> to vector<1x16x1xf32>
      tpu.vector_store %arg5[%c0_12, %c0_13, %c0_14], %21 {strides = array<i32>} : memref<1x16x1xf32, #tpu.memory_space<vmem>>, vector<1x16x1xf32>,
      %c0_15 = arith.constant 0 : index
      %c0_16 = arith.constant 0 : index
      %c0_17 = arith.constant 0 : index
      %22 = vector.load %arg6[%c0_15, %c0_16, %c0_17] : memref<1x16x1xf32, #tpu.memory_space<vmem>>, vector<1x16x1xf32>
      %23 = vector.shape_cast %22 : vector<1x16x1xf32> to vector<16x1xf32>
      %24 = arith.addf %23, %9 : vector<16x1xf32>
      %c0_18 = arith.constant 0 : index
      %c0_19 = arith.constant 0 : index
      %c0_20 = arith.constant 0 : index
      %25 = vector.load %arg6[%c0_18, %c0_19, %c0_20] : memref<1x16x1xf32, #tpu.memory_space<vmem>>, vector<1x16x1xf32>
      %26 = vector.shape_cast %25 : vector<1x16x1xf32> to vector<16x1xf32>
      %27 = vector.shape_cast %24 : vector<16x1xf32> to vector<1x16x1xf32>
      tpu.vector_store %arg6[%c0_18, %c0_19, %c0_20], %27 {strides = array<i32>} : memref<1x16x1xf32, #tpu.memory_space<vmem>>, vector<1x16x1xf32>,
    } else {
    }
    return
  }
  func.func @transform_0(%arg0: i32, %arg1: i32) -> (i32, i32) {
    %c0_i32 = arith.constant 0 : i32
    %c0_i32_0 = arith.constant 0 : i32
    %c0_i32_1 = arith.constant 0 : i32
    return %c0_i32, %c0_i32_0 : i32, i32
  }
  func.func @transform_1(%arg0: i32, %arg1: i32) -> (i32, i32) {
    %c1_i32 = arith.constant 1 : i32
    %0 = arith.muli %arg0, %c1_i32 : i32
    %1 = arith.addi %0, %arg1 : i32
    %c0_i32 = arith.constant 0 : i32
    %c0_i32_0 = arith.constant 0 : i32
    return %c0_i32, %1 : i32, i32
  }
  func.func @transform_2(%arg0: i32, %arg1: i32) -> (i32, i32) {
    %c1_i32 = arith.constant 1 : i32
    %0 = arith.muli %arg0, %c1_i32 : i32
    %1 = arith.addi %0, %arg1 : i32
    %c0_i32 = arith.constant 0 : i32
    %c0_i32_0 = arith.constant 0 : i32
    return %c0_i32, %1 : i32, i32
  }
  func.func @transform_3(%arg0: i32, %arg1: i32) -> (i32, i32, i32) {
    %c0_i32 = arith.constant 0 : i32
    %c0_i32_0 = arith.constant 0 : i32
    %c0_i32_1 = arith.constant 0 : i32
    return %arg0, %c0_i32, %c0_i32_0 : i32, i32, i32
  }
  func.func @transform_4(%arg0: i32, %arg1: i32) -> (i32, i32, i32) {
    %c0_i32 = arith.constant 0 : i32
    %c0_i32_0 = arith.constant 0 : i32
    %c0_i32_1 = arith.constant 0 : i32
    return %arg0, %c0_i32, %c0_i32_0 : i32, i32, i32
  }
}

</mosaic_0001>

<bundles_post_ra>
// kernel: decoder_block_forward.2
= control target key start
LH: loop header
LB: loop body
LE: loop exit
PB: predicated region body
PF: predicated region fallthrough
CT: control target
= control target key end

     0   :  { %s690_s15 = smov 0   ;;  %s692_s16 = smov 0   ;;  %s766_s0 = inlined_call_operand.vmem [shape: bf16[8,36], index: 0, kind: input, shape index: {}]   ;;  %s767_s1 = inlined_call_operand.vmem [shape: bf16[36,512], index: 1, kind: input, shape index: {}]   ;;  %s768_s2 = inlined_call_operand.vmem [shape: bf16[8,512], index: 2, kind: output, shape index: {0}]   ;;  %s769_s3 = inlined_call_operand.vmem [shape: f32[2,8,1], index: 3, kind: output, shape index: {1}]   ;;  %s770_s4 = inlined_call_operand.vmem [shape: f32[2,8,1], index: 4, kind: output, shape index: {2}]  }
   0x1   :  { %s694_s17 = smov 0   ;;  %s696_s18 = smov 0  }
   0x2   :  { %s698_s19 = smov 0  }
   0x3 LB: > { %s27_s20 = sadd.s32 1, %s658_s18  ;;  %p64_p1 = scmp.ne.s32.totalorder %s650_s16, %s646_s15  ;;  %s662_s19 = sphi %s698_s19, %s15_s19   ;;  %s658_s18 = sphi %s696_s18, %s774_s18   ;;  %s654_s17 = sphi %s694_s17, %s773_s17   ;;  %s650_s16 = sphi %s692_s16, %s772_s16   ;;  %s646_s15 = sphi %s690_s15, %s771_s15  }
   0x4   : > { %p29_p0 = scmp.ge.s32.totalorder %s27_s20, 2  ;;  %p65_p2 = scmp.eq.s32.totalorder %s662_s19, 0 }
   0x5   : > { %s57_s22 = sadd.s32 1, %s650_s16  ;;  %p552_p5 = scmp.ge.s32.totalorder %s662_s19, 2 }
   0x6   : > { %s776_s20 = smov (%p29_p0, %s27_s20), 0  ;;  %p66_p3 = por %p65_p2, %p64_p1 }
   0x7   : > { %s54_s21 = ssub.s32 %s658_s18, %s776_s20  ;;  %173 = sbr.rel (%p552_p5) target bundleno = 21 (0x15), region = 20 }
   0x8   : > { %p55_p4 = scmp.eq.s32.totalorder %s54_s21, 0 }
   0xa   : > { %s725_s23 = scalar_select %p55_p4, %s650_s16, %s57_s22  }
   0xe   : > { %176 = sbr.rel (!%p66_p3) target bundleno = 21 (0x15), region = 24  ;;  %s178_s24 = sand.u32 (%p66_p3), 1, %s650_s16  }
   0xf   : > { %s571_s25 = sshll.u32 (%p66_p3), %s658_s18, 3  ;;  %s573_s26 = smul.u32 (%p66_p3), 40, %s178_s24 }
  0x10   : > { %s184_s29 = scalar_lea.vmem (%p66_p3), %s767_s1, %s571_s25 }
  0x11   : > { %v220_v0 = vld [vmem:[%s184_s29] sm:$0xff] (%p66_p3)  ;;  %v222_v1 = vld [vmem:[%s184_s29 + $0x10] sm:$0xff] (%p66_p3)  ;;  %s180_s30 = scalar_lea.vmem (%p66_p3), [#allocation2], %s573_s26 }
  0x12   : > { %v224_v2 = vld [vmem:[%s184_s29 + $0x20] sm:$0xff] (%p66_p3)  ;;  %v226_v3 = vld [vmem:[%s184_s29 + $0x30] sm:$0xff] (%p66_p3)  ;;  %221 = vst [vmem:[%s180_s30] sm:$0xff] (%p66_p3), %v220_v0  ;;  %223 = vst [vmem:[%s180_s30 + $0x8] sm:$0xff] (%p66_p3), %v222_v1 }
  0x13   : > { %v228_v4 = vld [vmem:[%s184_s29 + $0x40] sm:$0xff] (%p66_p3)  ;;  %225 = vst [vmem:[%s180_s30 + $0x10] sm:$0xff] (%p66_p3), %v224_v2  ;;  %227 = vst [vmem:[%s180_s30 + $0x18] sm:$0xff] (%p66_p3), %v226_v3 }
  0x14   : > { %229 = vst [vmem:[%s180_s30 + $0x20] sm:$0xff] (%p66_p3), %v228_v4 }
  0x15 PF: > { %p555_p6 = scmp.ge.s32.totalorder %s662_s19, 1  ;;  %p234_p7 = scmp.lt.s32.totalorder %s662_s19, 3 }
  0x17   : > { %p235_p8 = pnand %p555_p6, %p234_p7 }
  0x18   : > { %s241_s5 = sand.u32 (!%p235_p8), 1, %s646_s15   ;;  %v664_v5 = vmov (!%p235_p8), 0   ;;  %vm329_vm0 = vcmask (!%p235_p8), 1041408   ;;  %v294_v14 = vld [vmem:[%s766_s0] sm:$0xf] (!%p235_p8)  ;;  %vm325_vm1 = vcmask (!%p235_p8), 293888  }
  0x19   : > { %238 = sbr.rel (%p235_p8) target bundleno = 404 (0x194), region = 62  ;;  %368 = vmatprep.mubr.bf16.mxu0 (!%p235_p8), %v664_v5  ;;  %s556_s10 = sshll.u32 (!%p235_p8), %s654_s17, 1  ;;  %vm398_vm2 = vcmask (!%p235_p8), 7168  }
  0x1a   : > { %s574_s6 = smul.u32 (!%p235_p8), 40, %s241_s5  ;;  %p279_p9 = scmp.lt.s32.totalorder (!%p235_p8), %s556_s10, 3 }
  0x1b   : > { %p285_p10 = scmp.lt.s32.totalorder (!%p235_p8), %s654_s17, 1 }
  0x1c   : > { %s243_s7 = scalar_lea.vmem (!%p235_p8), [#allocation2], %s574_s6 }
  0x1d   : > { %v616_v6 = vld [vmem:[%s243_s7 + $0x4] ss:$8 sps:$4 sm:$0xff] (!%p235_p8)   ;;  %v618_v7 = vld [vmem:[%s243_s7] ss:$8 sps:$4 sm:$0xff] (!%p235_p8)   ;;  %v619_v8 = vld [vmem:[%s243_s7 + $0x14] ss:$8 sps:$4 sm:$0xff] (!%p235_p8)  }
  0x1e   : > { %336 = vmatprep.subr.bf16.mxu0 (!%p235_p8), %v616_v6  ;;  %v299_v9 = vld [vmem:[%s243_s7 + $0x20] sm:$0x33] (!%p235_p8)  ;;  %v621_v10 = vld [vmem:[%s243_s7 + $0x10] ss:$8 sps:$4 sm:$0xff] (!%p235_p8)  }
  0x1f   : > { %337 = vmatpush1.bf16.msra.mxu0 (!%p235_p8), %v618_v7  ;;  %v565_v11 = vcombine.high (!%p235_p8), %v299_v9, %v299_v9  ;;  %v564_v12 = vcombine.low (!%p235_p8), %v299_v9, %v299_v9 }
  0x20   : > { %338 = vmatprep.subr.bf16.mxu0 %v619_v8  ;;  %s778_s10 = smov (!%p279_p9, %s556_s10), 3  ;;  %s780_s17 = smov (!%p285_p10, %s654_s17), 1 }
  0x21   : > { %v331_v13 = vsel %vm329_vm0, %v564_v12, 0  ;;  %s557_s11 = sshll.u32 %s778_s10, 2  ;;  %s558_s15 = sshll.u32 %s780_s17, 3 }
  0x22   : > { %s282_s14 = scalar_lea.vmem %s768_s2, %s557_s11  ;;  %s288_s24 = scalar_lea.vmem %s769_s3, %s558_s15 }
  0x23   : > { %339 = vmatpush1.bf16.msra.mxu0 %v621_v10  ;;  %s292_s27 = scalar_lea.vmem %s770_s4, %s558_s15 }
  0x24   : > { %566 = vmatprep.subr.msk.bf16.mxu0 %vm329_vm0, %v565_v11 }
  0x27   : > { %341 = vmatpush1.bf16.msra.mxu0 %v331_v13 }
  0x2a   : > { %567 = vmatmul.mubr.msk.bf16.vlgmr.msra.gmra.mrb[0].mxu0 %vm325_vm1, %v294_v14 }
  0xfd   : > { %v370_v15 = vpop.f32.mrb[0].mxu0 }
  0xfe   : > { %v372_v16 = vpop.f32.mrb[1].mxu0  ;;  %v389_v17 = vmul.f32 %v370_v15, %v370_v15 }
  0xff   : > { %v572_v18 = vpack.c.bf16 %v372_v16, %v370_v15  ;;  %v374_v19 = vpop.f32.mrb[2].mxu0  ;;  %v386_v20 = vadd.f32 %v372_v16, %v370_v15  ;;  %v390_v21 = vmul.f32 %v372_v16, %v372_v16 }
 0x100   : > { %v375_v22 = vpop.f32.mrb[3].mxu0 }
 0x101   : > { %385 = vst [vmem:[%s282_s14] sm:$0xff] %v572_v18  ;;  %387 = vadd.xlane.f32.xlu0 %v386_v20  ;;  %v391_v23 = vadd.f32 %v390_v21, %v389_v17 }
 0x105   : > { %392 = vadd.xlane.f32.xlu0 %v391_v23 }
 0x18e   : > { %v388_v24 = vpop.xlane.xlu0 %387 }
 0x18f   : > { %399 = vst.msk [vmem:[%s288_s24] sm:$0xff] %vm398_vm2, %v388_v24 }
 0x192   : > { %v393_v25 = vpop.xlane.xlu0 %392 }
 0x193   : > { %400 = vst.msk [vmem:[%s292_s27] sm:$0xff] %vm398_vm2, %v393_v25 }
 0x194 PF: > { %s15_s19 = sadd.s32 1, %s662_s19   ;;  %s771_s15 = smov %s650_s16 }
 0x195   : > { %p12_p11 = scmp.ge.s32.totalorder %s15_s19, 4   ;;  %s772_s16 = smov %s725_s23 }
 0x196   : > { %s773_s17 = smov %s658_s18  ;;  %s774_s18 = smov %s776_s20 }
 0x197   :  { %14 = sbr.rel (!%p12_p11) target bundleno = 3 (0x3), region = 133 }

// kernel: squeeze.38
= control target key start
LH: loop header
LB: loop body
LE: loop exit
PB: predicated region body
PF: predicated region fallthrough
CT: control target
= control target key end

     0   :  { %s37_s8 = smov 116   ;;  %vm7_vm0 = vcmask 31744   ;;  %s38_s9 = smov 120   ;;  %s55_s0 = inlined_call_operand.vmem [shape: f32[16], index: 0, kind: input, shape index: {}]   ;;  %s56_s1 = inlined_call_operand.vmem [shape: f32[4,4], index: 1, kind: output, shape index: {}]  }
   0x1   :  { %v4_v0 = vld [vmem:[%s55_s0] sm:$0x1]  ;;  %s36_s0 = smov 124  }
   0x2   :  { %5 = vst [vmem:[#allocation1] sm:$0x1] %v4_v0 }
   0x9   :  { %v9_v1 = vld [vmem:[#allocation1] sm:$0x1]  }
   0xa   :  { %v21_v2 = vld [vmem:[#allocation1] sm:$0x1]   ;;  %10 = vrot.lane.b32.xlu0 %v9_v1, %s36_s0 }
   0xb   :  { %22 = vrot.lane.b32.xlu1 %v21_v2, %s37_s8  ;;  %v6_v3 = vld [vmem:[#allocation1] sm:$0x1]  }
   0xc   :  { %v15_v4 = vld [vmem:[#allocation1] sm:$0x1]   ;;  %8 = vst.msk [vmem:[#allocation0] sm:$0x1] %vm7_vm0, %v6_v3  }
   0xe   :  { %16 = vrot.lane.b32.xlu0 %v15_v4, %s38_s9 }
  0x7c   :  { %v11_v5 = vpop.permute.xlu0 %10  }
  0x7d   :  { %v23_v6 = vpop.permute.xlu1 %22   ;;  %14 = vst.msk [vmem:[#allocation0 + $0x1] sm:$0x1] %vm7_vm0, %v11_v5  }
  0x7e   :  { %26 = vst.msk [vmem:[#allocation0 + $0x3] sm:$0x1] %vm7_vm0, %v23_v6  }
  0x80   :  { %v17_v7 = vpop.permute.xlu0 %16  }
  0x81   :  { %20 = vst.msk [vmem:[#allocation0 + $0x2] sm:$0x1] %vm7_vm0, %v17_v7  }
  0x88   :  { %v30_v8 = vld [vmem:[#allocation0] sm:$0xf] }
  0x89   :  { %32 = vst [vmem:[%s56_s1] sm:$0xf] %v30_v8 }

// kernel: decoder_block_forward.3
= control target key start
LH: loop header
LB: loop body
LE: loop exit
PB: predicated region body
PF: predicated region fallthrough
CT: control target
= control target key end

     0   :  { %s819_s15 = smov 0   ;;  %s821_s16 = smov 0   ;;  %s906_s0 = inlined_call_operand.vmem [shape: bf16[16,72], index: 0, kind: input, shape index: {}]   ;;  %s907_s1 = inlined_call_operand.vmem [shape: bf16[72,512], index: 1, kind: input, shape index: {}]   ;;  %s908_s2 = inlined_call_operand.vmem [shape: bf16[16,512], index: 2, kind: output, shape index: {0}]   ;;  %s909_s3 = inlined_call_operand.vmem [shape: f32[2,16,1], index: 3, kind: output, shape index: {1}]   ;;  %s910_s4 = inlined_call_operand.vmem [shape: f32[2,16,1], index: 4, kind: output, shape index: {2}]  }
   0x1   :  { %s823_s17 = smov 0   ;;  %s825_s18 = smov 0  }
   0x2   :  { %s827_s19 = smov 0  }
   0x3 LB: > { %s27_s20 = sadd.s32 1, %s787_s18  ;;  %s657_s21 = sadd.s32 4294967295, %s791_s19   ;;  %s791_s19 = sphi %s827_s19, %s15_s19   ;;  %s787_s18 = sphi %s825_s18, %s915_s18   ;;  %s783_s17 = sphi %s823_s17, %s914_s17   ;;  %s779_s16 = sphi %s821_s16, %s913_s16   ;;  %s775_s15 = sphi %s819_s15, %s912_s15  }
   0x4   : > { %p29_p0 = scmp.ge.s32.totalorder %s27_s20, 2  ;;  %p64_p1 = scmp.ne.s32.totalorder %s779_s16, %s775_s15 }
   0x5   : > { %p65_p2 = scmp.eq.s32.totalorder %s791_s19, 0  ;;  %p96_p4 = scmp.eq.s32.totalorder %s657_s21, 1 }
   0x6   : > { %s917_s20 = smov (%p29_p0, %s27_s20), 0  ;;  %s57_s23 = sadd.s32 1, %s779_s16 }
   0x7   : > { %p66_p3 = por %p65_p2, %p64_p1  ;;  %s54_s22 = ssub.s32 %s787_s18, %s917_s20 }
   0x8   : > { %p55_p5 = scmp.eq.s32.totalorder %s54_s22, 0  ;;  %p854_p6 = por %p96_p4, %p64_p1 }
   0x9   : > { %p660_p7 = scmp.ge.s32.totalorder %s791_s19, 2 }
   0xa   : > { %s859_s25 = scalar_select %p55_p5, %s779_s16, %s57_s23  }
   0xb   : > { %173 = sbr.rel (%p660_p7) target bundleno = 27 (0x1b), region = 20 }
  0x12   : > { %176 = sbr.rel (!%p66_p3) target bundleno = 27 (0x1b), region = 24  ;;  %s178_s26 = sand.u32 (%p66_p3), 1, %s779_s16  }
  0x13   : > { %s689_s27 = sshll.u32 (%p66_p3), %s787_s18, 3  ;;  %s695_s28 = smul.u32 (%p66_p3), 72, %s178_s26 }
  0x14   : > { %s184_s5 = scalar_lea.vmem (%p66_p3), %s907_s1, %s689_s27 }
  0x15   : > { %v228_v0 = vld [vmem:[%s184_s5] sm:$0xff] (%p66_p3)  ;;  %v230_v1 = vld [vmem:[%s184_s5 + $0x10] sm:$0xff] (%p66_p3)  ;;  %s180_s6 = scalar_lea.vmem (%p66_p3), [#allocation2], %s695_s28 }
  0x16   : > { %v232_v2 = vld [vmem:[%s184_s5 + $0x20] sm:$0xff] (%p66_p3)  ;;  %v234_v3 = vld [vmem:[%s184_s5 + $0x30] sm:$0xff] (%p66_p3)  ;;  %229 = vst [vmem:[%s180_s6] sm:$0xff] (%p66_p3), %v228_v0  ;;  %231 = vst [vmem:[%s180_s6 + $0x8] sm:$0xff] (%p66_p3), %v230_v1 }
  0x17   : > { %v236_v4 = vld [vmem:[%s184_s5 + $0x40] sm:$0xff] (%p66_p3)  ;;  %v238_v5 = vld [vmem:[%s184_s5 + $0x50] sm:$0xff] (%p66_p3)  ;;  %233 = vst [vmem:[%s180_s6 + $0x10] sm:$0xff] (%p66_p3), %v232_v2  ;;  %235 = vst [vmem:[%s180_s6 + $0x18] sm:$0xff] (%p66_p3), %v234_v3 }
  0x18   : > { %237 = vst [vmem:[%s180_s6 + $0x20] sm:$0xff] (%p66_p3), %v236_v4  ;;  %239 = vst [vmem:[%s180_s6 + $0x28] sm:$0xff] (%p66_p3), %v238_v5  ;;  %v240_v6 = vld [vmem:[%s184_s5 + $0x60] sm:$0xff] (%p66_p3)  ;;  %v242_v7 = vld [vmem:[%s184_s5 + $0x70] sm:$0xff] (%p66_p3) }
  0x19   : > { %v244_v8 = vld [vmem:[%s184_s5 + $0x80] sm:$0xff]  ;;  %241 = vst [vmem:[%s180_s6 + $0x30] sm:$0xff] %v240_v6  ;;  %243 = vst [vmem:[%s180_s6 + $0x38] sm:$0xff] %v242_v7 }
  0x1a   : > { %245 = vst [vmem:[%s180_s6 + $0x40] sm:$0xff] %v244_v8 }
  0x1b PF: > { %p663_p8 = scmp.ge.s32.totalorder %s791_s19, 1  ;;  %p250_p9 = scmp.lt.s32.totalorder %s791_s19, 3 }
  0x1d   : > { %p251_p10 = pnand %p663_p8, %p250_p9 }
  0x1e   : > { %s257_s7 = sand.u32 (!%p251_p10), 1, %s775_s15   ;;  %v793_v9 = vmov (!%p251_p10), 0   ;;  %vm371_vm0 = vcmask (!%p251_p10), 1043456   ;;  %v752_v22 = vld [vmem:[%s906_s0] sm:$0xff] (!%p251_p10)   ;;  %vm367_vm1 = vcmask (!%p251_p10), 588800   ;;  %p295_p11 = scmp.lt.s32.totalorder (!%p251_p10), %s783_s17, 1 }
  0x1f   : > { %254 = sbr.rel (%p251_p10) target bundleno = 420 (0x1a4), region = 62  ;;  %410 = vmatprep.mubr.bf16.mxu0 (!%p251_p10), %v793_v9  ;;  %s664_s12 = sshll.u32 (!%p251_p10), %s257_s7, 4  ;;  %vm455_vm2 = vcmask (!%p251_p10), 7168  }
  0x20   : > { %s696_s8 = smul.u32 (!%p251_p10), 72, %s257_s7  ;;  %s276_s13 = scalar_lea.vmem (!%p251_p10), [#allocation3], %s664_s12 }
  0x22   : > { %s259_s9 = scalar_lea.vmem (!%p251_p10), [#allocation2], %s696_s8 }
  0x23   : > { %v738_v10 = vld [vmem:[%s259_s9 + $0x4] ss:$8 sps:$4 sm:$0xff] (!%p251_p10)   ;;  %v740_v11 = vld [vmem:[%s259_s9] ss:$8 sps:$4 sm:$0xff] (!%p251_p10)   ;;  %v741_v12 = vld [vmem:[%s259_s9 + $0x14] ss:$8 sps:$4 sm:$0xff] (!%p251_p10)  }
  0x24   : > { %378 = vmatprep.subr.bf16.mxu0 (!%p251_p10), %v738_v10  ;;  %v743_v13 = vld [vmem:[%s259_s9 + $0x10] ss:$8 sps:$4 sm:$0xff] (!%p251_p10)   ;;  %v744_v14 = vld [vmem:[%s259_s9 + $0x24] ss:$8 sps:$4 sm:$0xff] (!%p251_p10)   ;;  %v746_v15 = vld [vmem:[%s259_s9 + $0x20] ss:$8 sps:$4 sm:$0xff] (!%p251_p10)  }
  0x25   : > { %379 = vmatpush1.bf16.msra.mxu0 (!%p251_p10), %v740_v11  ;;  %v747_v16 = vld [vmem:[%s259_s9 + $0x34] ss:$8 sps:$4 sm:$0xff] (!%p251_p10)   ;;  %v316_v17 = vld [vmem:[%s259_s9 + $0x40] sm:$0xff] (!%p251_p10)  ;;  %v749_v18 = vld [vmem:[%s259_s9 + $0x30] ss:$8 sps:$4 sm:$0xff] (!%p251_p10)  }
  0x26   : > { %380 = vmatprep.subr.bf16.mxu0 %v741_v12  ;;  %v679_v19 = vcombine.high %v316_v17, %v316_v17  ;;  %v678_v20 = vcombine.low %v316_v17, %v316_v17  ;;  %s296_s14 = scalar_select %p295_p11, %s783_s17, 1 }
  0x27   : > { %s694_s29 = sshll.u32 (%p854_p6), %s783_s17, 3 }
  0x28   : > { %v373_v21 = vsel %vm371_vm0, %v678_v20, 0  ;;  %s690_s15 = sshll.u32 %s296_s14, 4  ;;  %s497_s6 = scalar_lea.vmem (%p854_p6), %s908_s2, %s694_s29 }
  0x29   : > { %381 = vmatpush1.bf16.msra.mxu0 %v743_v13  ;;  %s299_s23 = scalar_lea.vmem %s909_s3, %s690_s15  ;;  %s304_s28 = scalar_lea.vmem %s910_s4, %s690_s15 }
  0x2a   : > { %382 = vmatprep.subr.bf16.mxu0 %v744_v14 }
  0x2d   : > { %383 = vmatpush1.bf16.msra.mxu0 %v746_v15 }
  0x2e   : > { %384 = vmatprep.subr.bf16.mxu0 %v747_v16 }
  0x31   : > { %385 = vmatpush1.bf16.msra.mxu0 %v749_v18 }
  0x32   : > { %680 = vmatprep.subr.msk.bf16.mxu0 %vm371_vm0, %v679_v19 }
  0x35   : > { %387 = vmatpush1.bf16.msra.mxu0 %v373_v21 }
  0x38   : > { %681 = vmatmul.mubr.msk.bf16.vlgmr.msra.gmra.mrb[0].mxu0 %vm367_vm1, %v752_v22 }
 0x10b   : > { %v412_v23 = vpop.f32.mrb[0].mxu0 }
 0x10c   : > { %v414_v24 = vpop.f32.mrb[1].mxu0  ;;  %v441_v25 = vmul.f32 %v412_v23, %v412_v23 }
 0x10d   : > { %v692_v26 = vpack.c.bf16 %v414_v24, %v412_v23  ;;  %v416_v27 = vpop.f32.mrb[2].mxu0  ;;  %v435_v28 = vadd.f32 %v414_v24, %v412_v23  ;;  %v442_v29 = vmul.f32 %v414_v24, %v414_v24 }
 0x10e   : > { %v418_v30 = vpop.f32.mrb[3].mxu0  ;;  %v443_v31 = vmul.f32 %v416_v27, %v416_v27 }
 0x10f   : > { %v693_v32 = vpack.c.bf16 %v418_v30, %v416_v27  ;;  %433 = vst [vmem:[%s276_s13] sm:$0xff] %v692_v26  ;;  %v444_v33 = vmul.f32 %v418_v30, %v418_v30  ;;  %436 = vadd.xlane.f32.xlu0 %v435_v28  ;;  %v445_v34 = vadd.f32 %v442_v29, %v441_v25 }
 0x110   : > { %v438_v35 = vadd.f32 %v418_v30, %v416_v27 }
 0x111   : > { %434 = vst [vmem:[%s276_s13 + $0x8] sm:$0xff] %v693_v32  ;;  %446 = vadd.xlane.f32.xlu1 %v445_v34  ;;  %v448_v36 = vadd.f32 %v444_v33, %v443_v31 }
 0x113   : > { %439 = vadd.xlane.f32.xlu0 %v438_v35 }
 0x115   : > { %449 = vadd.xlane.f32.xlu1 %v448_v36 }
 0x116   : > { %v527_v41 = vld [vmem:[%s276_s13] sm:$0xff] (%p854_p6) }
 0x117   : > { %528 = vst [vmem:[%s497_s6] sm:$0xff] (%p854_p6), %v527_v41 }
 0x118   : > { %v529_v42 = vld [vmem:[%s276_s13 + $0x8] sm:$0xff] (%p854_p6) }
 0x119   : > { %530 = vst [vmem:[%s497_s6 + $0x10] sm:$0xff] (%p854_p6), %v529_v42 }
 0x19c   : > { %v437_v37 = vpop.xlane.xlu0 %436 }
 0x19d   : > { %456 = vst.msk [vmem:[%s299_s23] sm:$0xff] %vm455_vm2, %v437_v37  ;;  %493 = sbr.rel (!%p854_p6) target bundleno = 420 (0x1a4), region = 78 }
 0x19e   : > { %v447_v38 = vpop.xlane.xlu1 %446 }
 0x19f   : > { %458 = vst.msk [vmem:[%s304_s28] sm:$0xff] %vm455_vm2, %v447_v38 }
 0x1a0   : > { %v440_v39 = vpop.xlane.xlu0 %439 }
 0x1a1   : > { %457 = vst.msk [vmem:[%s299_s23 + $0x8] sm:$0xff] %vm455_vm2, %v440_v39 }
 0x1a2   : > { %v450_v40 = vpop.xlane.xlu1 %449 }
 0x1a3   : > { %459 = vst.msk [vmem:[%s304_s28 + $0x8] sm:$0xff] %vm455_vm2, %v450_v40 }
 0x1a4 PF: > { %s15_s19 = sadd.s32 1, %s791_s19   ;;  %s912_s15 = smov %s779_s16 }
 0x1a5   : > { %p12_p12 = scmp.ge.s32.totalorder %s15_s19, 4   ;;  %s913_s16 = smov %s859_s25 }
 0x1a6   : > { %s914_s17 = smov %s787_s18  ;;  %s915_s18 = smov %s917_s20 }
 0x1a7   :  { %14 = sbr.rel (!%p12_p12) target bundleno = 3 (0x3), region = 171 }

</bundles_post_ra>
